<compile_context>
chip_gen: v7x
topology: tpu7x:2x2x1
jax: 0.10.0
libtpu: 0.0.40
codegen_flags: <defaults>
</compile_context>

<pallas_src>
import jax
import jax.numpy as jnp
from jax.experimental import pallas as pl
from jax.experimental.pallas import tpu as pltpu


# ----------------------------- kernel ---------------------------------------


def _pca_kernel(x_ref, w1_ref, b1_ref, w2eff_ref, weff_ref, beff_ref, o_ref):
    x = x_ref[...]                                              # [TB, Dp]

    # frozen MLP layer 1 (MXU): [TB, Dp] @ [Dp, Hmp], ReLU on VPU
    h = jnp.dot(x, w1_ref[...], preferred_element_type=jnp.float32)
    h = jnp.maximum(h + b1_ref[...], 0.0)                       # [TB, Hmp]

    # lin1 + decoder folded into one lane-dense MXU pass: [TB, Dp] @ [Dp, Dp]
    y = jnp.dot(x, weff_ref[...], preferred_element_type=jnp.float32)
    # mlp head + decoder row 0 folded into a second lane-dense MXU pass
    y = y + jnp.dot(h, w2eff_ref[...], preferred_element_type=jnp.float32)
    # all constant bias terms fused into one broadcast add
    o_ref[...] = y + beff_ref[...]                              # [TB, Dp]


# ----------------------------- wrapper ---------------------------------------


def _round_up(n, m):
    return ((n + m - 1) // m) * m


def _pad2(a, rows, cols):
    r, c = a.shape
    return jnp.pad(a, ((0, rows - r), (0, cols - c)))


def my_pca_forward(x, params, *, tb=512):
    """x: [B, D] float32. params: dict of weights (see init_params).

    tb: max batch-tile rows. Default 512 amortizes the ~0.35us/step grid
    overhead; halve on v7x (64 MiB VMEM) for large D.
    """
    B, D = x.shape
    Hm = params["mlp_w1"].shape[1]

    # lane-dense padding (multiples of 128 on the lane axis)
    Dp = _round_up(D, 128)
    Hmp = _round_up(Hm, 128)

    # offline algebraic fold of lin1/decoder/mlp-head (+ all bias terms):
    #   y = x @ W_eff + relu(x@mw1+mb1) @ W2_eff + b_eff
    dec_w = params["dec_w"]                                   # [hidden+1, D]
    dw0 = dec_w[0:1, :]                                       # [1, D]
    dw_rest = dec_w[1:, :]                                    # [hidden, D]
    w_eff = params["lin1_w"] @ dw_rest                        # [D, D]
    w2_eff = params["mlp_w2"] @ dw0                           # [Hm, D]
    b_eff = (params["lin1_b"] @ dw_rest + params["dec_b"]
             + params["mlp_b2"] * dw0)                        # [1, D]

    # batch tiling
    TB = min(tb, _round_up(B, 8))
    Bp = _round_up(B, TB)
    grid = (Bp // TB,)

    # zero-pad operands (zeros in padded cols/rows contribute nothing)
    x_p = _pad2(x, Bp, Dp)
    w1_p = _pad2(params["mlp_w1"], Dp, Hmp)
    b1_p = _pad2(params["mlp_b1"], 1, Hmp)
    w2eff_p = _pad2(w2_eff, Hmp, Dp)
    weff_p = _pad2(w_eff, Dp, Dp)
    beff_p = _pad2(b_eff, 1, Dp)

    const2 = lambda i: (0, 0)

    flops = 2 * Bp * Dp * Hmp + 2 * Bp * Dp * Dp + 2 * Bp * Hmp * Dp + 4 * Bp * Dp
    bytes_accessed = 4 * (2 * Bp * Dp                      # x in, y out
                          + Dp * Hmp + Dp * Dp + Hmp * Dp  # weights
                          + Hmp + Dp)                      # bias vectors

    out = pl.pallas_call(
        _pca_kernel,
        out_shape=jax.ShapeDtypeStruct((Bp, Dp), jnp.float32),
        grid=grid,
        in_specs=[
            pl.BlockSpec((TB, Dp), lambda i: (i, 0)),      # x tile (pipelined)
            pl.BlockSpec((Dp, Hmp), const2),               # mlp_w1 (resident)
            pl.BlockSpec((1, Hmp), const2),                # mlp_b1
            pl.BlockSpec((Hmp, Dp), const2),               # W2_eff
            pl.BlockSpec((Dp, Dp), const2),                # W_eff
            pl.BlockSpec((1, Dp), const2),                 # b_eff
        ],
        out_specs=pl.BlockSpec((TB, Dp), lambda i: (i, 0)),
        compiler_params=pltpu.CompilerParams(
            dimension_semantics=("parallel",)),            # megacore / v7x 2-TC
        cost_estimate=pl.CostEstimate(
            flops=flops, transcendentals=0, bytes_accessed=bytes_accessed),
    )(x_p, w1_p, b1_p, w2eff_p, weff_p, beff_p)

    return out[:B, :D]

    # TODO(synk): optional bf16 cast of x / W_eff / W2_eff / mlp_w1 for
    # v6e/v7x MXU throughput (keep f32 accumulation); kept f32 here so the
    # result stays bit-tight against the f32 reference.


# ----------------------------- params / reference ----------------------------


def init_params(key, input_size, hidden_size=2, mlp_hidden=16):
    """Deterministic synthetic parameters (no checkpoint load).
    Linear weights stored as [in, out]; biases as [1, out]."""
    ks = jax.random.split(key, 8)

    def w(k, shape, fan_in):
        return jax.random.normal(k, shape, jnp.float32) / jnp.sqrt(fan_in)

    return {
        # trained_mlp: Linear(D, Hm) -> ReLU -> Linear(Hm, 1)
        "mlp_w1": w(ks[0], (input_size, mlp_hidden), input_size),
        "mlp_b1": w(ks[1], (1, mlp_hidden), input_size),
        "mlp_w2": w(ks[2], (mlp_hidden, 1), mlp_hidden),
        "mlp_b2": w(ks[3], (1, 1), mlp_hidden),
        # lin1: Linear(D, hidden)
        "lin1_w": w(ks[4], (input_size, hidden_size), input_size),
        "lin1_b": w(ks[5], (1, hidden_size), input_size),
        # decoder: Linear(hidden+1, D)
        "dec_w": w(ks[6], (hidden_size + 1, input_size), hidden_size + 1),
        "dec_b": w(ks[7], (1, input_size), hidden_size + 1),
    }


def my_pca_reference(x, p):
    """Pure-JAX reference matching the PyTorch module exactly."""
    h = jnp.maximum(x @ p["mlp_w1"] + p["mlp_b1"], 0.0)
    x0 = h @ p["mlp_w2"] + p["mlp_b2"]
    x1 = x @ p["lin1_w"] + p["lin1_b"]
    z = jnp.concatenate([x0, x1], axis=-1)
    return z @ p["dec_w"] + p["dec_b"]


if __name__ == "__main__":
    B, D, HIDDEN, MLP_HIDDEN = 8, 32, 2, 16

    key = jax.random.PRNGKey(0)
    kx, kp = jax.random.split(key)
    x = jax.random.normal(kx, (B, D), jnp.float32)
    params = init_params(kp, D, hidden_size=HIDDEN, mlp_hidden=MLP_HIDDEN)

    out = my_pca_forward(x, params)
    out = jax.block_until_ready(out)

    ref = my_pca_reference(x, params)
    assert out.shape == (B, D)
    # Folding lin1/decoder/mlp-head changes rounding order slightly; still f32-tight.
    assert jnp.allclose(out, ref, atol=1e-4, rtol=1e-4), "mismatch vs reference"
    print("KERNEL_OK")
</pallas_src>

<mosaic_0001>
module attributes {stable_mosaic.version = 11 : i64} {
  func.func @_pca_kernel(%arg0: i32, %arg1: memref<8x128xf32, #tpu.memory_space<vmem>>, %arg2: memref<128x128xf32, #tpu.memory_space<vmem>>, %arg3: memref<1x128xf32, #tpu.memory_space<vmem>>, %arg4: memref<128x128xf32, #tpu.memory_space<vmem>>, %arg5: memref<128x128xf32, #tpu.memory_space<vmem>>, %arg6: memref<1x128xf32, #tpu.memory_space<vmem>>, %arg7: memref<8x128xf32, #tpu.memory_space<vmem>>) attributes {dimension_semantics = [#tpu.dimension_semantics<parallel>], iteration_bounds = array<i64: 1>, scalar_prefetch = 0 : i64, scratch_operands = 0 : i64, tpu.core_type = #tpu.core_type<tc>, window_params = [{transform_indices = @transform_0, window_bounds = array<i64: 8, 128>}, {pipeline_mode = #tpu.pipeline_mode<synchronous>, transform_indices = @transform_1, window_bounds = array<i64: 128, 128>}, {pipeline_mode = #tpu.pipeline_mode<synchronous>, transform_indices = @transform_2, window_bounds = array<i64: 1, 128>}, {pipeline_mode = #tpu.pipeline_mode<synchronous>, transform_indices = @transform_3, window_bounds = array<i64: 128, 128>}, {pipeline_mode = #tpu.pipeline_mode<synchronous>, transform_indices = @transform_4, window_bounds = array<i64: 128, 128>}, {pipeline_mode = #tpu.pipeline_mode<synchronous>, transform_indices = @transform_5, window_bounds = array<i64: 1, 128>}, {transform_indices = @transform_6, window_bounds = array<i64: 8, 128>}]} {
    %c0 = arith.constant 0 : index
    %c0_0 = arith.constant 0 : index
    %0 = vector.load %arg1[%c0, %c0_0] : memref<8x128xf32, #tpu.memory_space<vmem>>, vector<8x128xf32>
    %c0_1 = arith.constant 0 : index
    %c0_2 = arith.constant 0 : index
    %1 = vector.load %arg2[%c0_1, %c0_2] : memref<128x128xf32, #tpu.memory_space<vmem>>, vector<128x128xf32>
    %cst = arith.constant dense<0.000000e+00> : vector<8x128xf32>
    %2 = tpu.matmul %0, %1, %cst {dimension_numbers = #tpu.dot_dimension_numbers<[1], [0], [0], [1], [0, 0, 1, 1], [], []>} : vector<8x128xf32>, vector<128x128xf32>, vector<8x128xf32> -> vector<8x128xf32>
    %c0_3 = arith.constant 0 : index
    %c0_4 = arith.constant 0 : index
    %3 = vector.load %arg3[%c0_3, %c0_4] : memref<1x128xf32, #tpu.memory_space<vmem>>, vector<1x128xf32>
    %4 = vector.broadcast %3 : vector<1x128xf32> to vector<8x128xf32>
    %5 = arith.addf %2, %4 : vector<8x128xf32>
    %cst_5 = arith.constant 0.000000e+00 : f32
    %6 = vector.broadcast %cst_5 : f32 to vector<8x128xf32>
    %7 = arith.maximumf %5, %6 : vector<8x128xf32>
    %c0_6 = arith.constant 0 : index
    %c0_7 = arith.constant 0 : index
    %8 = vector.load %arg5[%c0_6, %c0_7] : memref<128x128xf32, #tpu.memory_space<vmem>>, vector<128x128xf32>
    %cst_8 = arith.constant dense<0.000000e+00> : vector<8x128xf32>
    %9 = tpu.matmul %0, %8, %cst_8 {dimension_numbers = #tpu.dot_dimension_numbers<[1], [0], [0], [1], [0, 0, 1, 1], [], []>} : vector<8x128xf32>, vector<128x128xf32>, vector<8x128xf32> -> vector<8x128xf32>
    %c0_9 = arith.constant 0 : index
    %c0_10 = arith.constant 0 : index
    %10 = vector.load %arg4[%c0_9, %c0_10] : memref<128x128xf32, #tpu.memory_space<vmem>>, vector<128x128xf32>
    %cst_11 = arith.constant dense<0.000000e+00> : vector<8x128xf32>
    %11 = tpu.matmul %7, %10, %cst_11 {dimension_numbers = #tpu.dot_dimension_numbers<[1], [0], [0], [1], [0, 0, 1, 1], [], []>} : vector<8x128xf32>, vector<128x128xf32>, vector<8x128xf32> -> vector<8x128xf32>
    %12 = arith.addf %9, %11 : vector<8x128xf32>
    %c0_12 = arith.constant 0 : index
    %c0_13 = arith.constant 0 : index
    %13 = vector.load %arg6[%c0_12, %c0_13] : memref<1x128xf32, #tpu.memory_space<vmem>>, vector<1x128xf32>
    %14 = vector.broadcast %13 : vector<1x128xf32> to vector<8x128xf32>
    %15 = arith.addf %12, %14 : vector<8x128xf32>
    %c0_14 = arith.constant 0 : index
    %c0_15 = arith.constant 0 : index
    %16 = vector.load %arg7[%c0_14, %c0_15] : memref<8x128xf32, #tpu.memory_space<vmem>>, vector<8x128xf32>
    tpu.vector_store %arg7[%c0_14, %c0_15], %15 {strides = array<i32>} : memref<8x128xf32, #tpu.memory_space<vmem>>, vector<8x128xf32>,
    return
  }
  func.func @transform_0(%arg0: i32) -> (i32, i32) {
    %c0_i32 = arith.constant 0 : i32
    %c0_i32_0 = arith.constant 0 : i32
    return %arg0, %c0_i32 : i32, i32
  }
  func.func @transform_1(%arg0: i32) -> (i32, i32) {
    %c0_i32 = arith.constant 0 : i32
    %c0_i32_0 = arith.constant 0 : i32
    %c0_i32_1 = arith.constant 0 : i32
    return %c0_i32, %c0_i32_0 : i32, i32
  }
  func.func @transform_2(%arg0: i32) -> (i32, i32) {
    %c0_i32 = arith.constant 0 : i32
    %c0_i32_0 = arith.constant 0 : i32
    %c0_i32_1 = arith.constant 0 : i32
    return %c0_i32, %c0_i32_0 : i32, i32
  }
  func.func @transform_3(%arg0: i32) -> (i32, i32) {
    %c0_i32 = arith.constant 0 : i32
    %c0_i32_0 = arith.constant 0 : i32
    %c0_i32_1 = arith.constant 0 : i32
    return %c0_i32, %c0_i32_0 : i32, i32
  }
  func.func @transform_4(%arg0: i32) -> (i32, i32) {
    %c0_i32 = arith.constant 0 : i32
    %c0_i32_0 = arith.constant 0 : i32
    %c0_i32_1 = arith.constant 0 : i32
    return %c0_i32, %c0_i32_0 : i32, i32
  }
  func.func @transform_5(%arg0: i32) -> (i32, i32) {
    %c0_i32 = arith.constant 0 : i32
    %c0_i32_0 = arith.constant 0 : i32
    %c0_i32_1 = arith.constant 0 : i32
    return %c0_i32, %c0_i32_0 : i32, i32
  }
  func.func @transform_6(%arg0: i32) -> (i32, i32) {
    %c0_i32 = arith.constant 0 : i32
    %c0_i32_0 = arith.constant 0 : i32
    return %arg0, %c0_i32 : i32, i32
  }
}

</mosaic_0001>

<bundles_post_ra>
// kernel: tpu_custom_call.1
= control target key start
LH: loop header
LB: loop body
LE: loop exit
PB: predicated region body
PF: predicated region fallthrough
CT: control target
= control target key end

     0   :  { %11 = vsyncpa [#allocation3], 0  ;;  %s878_s0 = inlined_call_operand.hbm [shape: f32[8,128], index: 0, kind: input, shape index: {}]   ;;  %s879_s1 = inlined_call_operand.hbm [shape: f32[128,128], index: 1, kind: input, shape index: {}]   ;;  %s880_s2 = inlined_call_operand.vmem [shape: f32[1,128], index: 2, kind: input, shape index: {}]   ;;  %s881_s3 = inlined_call_operand.hbm [shape: f32[128,128], index: 3, kind: input, shape index: {}]   ;;  %s882_s4 = inlined_call_operand.hbm [shape: f32[128,128], index: 4, kind: input, shape index: {}]   ;;  %s883_s5 = inlined_call_operand.vmem [shape: f32[1,128], index: 5, kind: input, shape index: {}]   ;;  %s884_s6 = inlined_call_operand.hbm [shape: f32[8,128], index: 6, kind: output, shape index: {}]  }
   0x1   :  { %12 = vsyncpa [#allocation6], 0 }
   0x2   :  { %13 = vsyncpa [#allocation9], 0 }
   0x3   :  { %14 = vsyncpa [#allocation4], 0  ;;  %s728_s21 = smov [#allocation5]   ;;  %s610_s25 = scalar_lea.hbm %s879_s1, 2048 }
   0x4   :  { %s30_s22 = sshll.u32 %s728_s21, 4  ;;  %p611_p0 = scmp.ne.s32.totalorder %s879_s1, %s610_s25  ;;  %s31_s22 = int_to_ptr.vmem [resolvable:$true] %s30_s22 }
   0x5   :  { %p614_p1 = scmp.lt.u32.totalorder %s610_s25, %s879_s1 }
   0x7   :  { %p616_p2 = pnand %p614_p1, %p611_p0 }
   0x9   :  { %619 = shalt.err (!%p616_p2)
}
   0xa   :  { %s620_s30 = scalar_lea.vmem %s31_s22, 2048  ;;  %p625_p4 = scmp.lt.s32.totalorder %s31_s22, %s31_s22 }
   0xb   :  { %p621_p3 = scmp.ne.s32.totalorder %s31_s22, %s620_s30  ;;  %p626_p5 = scmp.lt.s32.totalorder %s620_s30, %s620_s30 }
   0xd   :  { %p627_p6 = por %p626_p5, %p625_p4 }
   0xf   :  { %p628_p7 = pnand %p627_p6, %p621_p3 }
  0x11   :  { %631 = shalt.err (!%p628_p7)
}
  0x12   :  { %s729_s7 = smov 128   ;;  %s730_s8 = smov 8  }
  0x13   :  { %36 = dma.hbm_to_vmem [thread:$0]  %s879_s1, 2048, %s31_s22, [#allocation6], %s729_s7, %s729_s7, %s730_s8  }
  0x14   :  { %s731_s11 = smov [#allocation2]   ;;  %s732_s13 = smov [#allocation7]  }
  0x15   :  { %s21_s12 = sshll.u32 %s731_s11, 4  ;;  %s44_s14 = sshll.u32 %s732_s13, 4  ;;  %s22_s12 = int_to_ptr.vmem [resolvable:$true] %s21_s12  ;;  %s45_s14 = int_to_ptr.vmem [resolvable:$true] %s44_s14 }
  0x16   :  { %s632_s17 = scalar_lea.hbm %s878_s0, 128 }
  0x17   :  { %p633_p8 = scmp.ne.s32.totalorder %s878_s0, %s632_s17  ;;  %p636_p9 = scmp.lt.u32.totalorder %s632_s17, %s878_s0 }
  0x19   :  { %p638_p10 = pnand %p636_p9, %p633_p8 }
  0x1b   :  { %641 = shalt.err (!%p638_p10)
}
  0x1c   :  { %s642_s1 = scalar_lea.vmem %s22_s12, 128  ;;  %p647_p12 = scmp.lt.s32.totalorder %s22_s12, %s22_s12 }
  0x1d   :  { %p643_p11 = scmp.ne.s32.totalorder %s22_s12, %s642_s1  ;;  %p648_p13 = scmp.lt.s32.totalorder %s642_s1, %s642_s1 }
  0x1f   :  { %p649_p0 = por %p648_p13, %p647_p12 }
  0x21   :  { %p650_p1 = pnand %p649_p0, %p643_p11 }
  0x23   :  { %653 = shalt.err (!%p650_p1)
}
  0x24   :  { %24 = dma.hbm_to_vmem [thread:$0]  %s878_s0, 128, %s22_s12, [#allocation3]  }
  0x25   :  { %s654_s26 = scalar_lea.hbm %s881_s3, 2048 }
  0x26   :  { %p655_p2 = scmp.ne.s32.totalorder %s881_s3, %s654_s26  ;;  %p658_p3 = scmp.lt.u32.totalorder %s654_s26, %s881_s3 }
  0x28   :  { %p660_p4 = pnand %p658_p3, %p655_p2 }
  0x2a   :  { %663 = shalt.err (!%p660_p4)
}
  0x2b   :  { %s664_s9 = scalar_lea.vmem %s45_s14, 2048  ;;  %p669_p6 = scmp.lt.s32.totalorder %s45_s14, %s45_s14 }
  0x2c   :  { %p665_p5 = scmp.ne.s32.totalorder %s45_s14, %s664_s9  ;;  %p670_p7 = scmp.lt.s32.totalorder %s664_s9, %s664_s9 }
  0x2e   :  { %p671_p8 = por %p670_p7, %p669_p6 }
  0x30   :  { %p672_p9 = pnand %p671_p8, %p665_p5 }
  0x32   :  { %675 = shalt.err (!%p672_p9)
}
  0x33   :  { %50 = dma.hbm_to_vmem [thread:$0]  %s881_s3, 2048, %s45_s14, [#allocation6], %s729_s7, %s729_s7, %s730_s8  }
  0x34   :  { %s733_s11 = smov [#allocation8]   ;;  %s676_s16 = scalar_lea.hbm %s882_s4, 2048 }
  0x35   :  { %s56_s12 = sshll.u32 %s733_s11, 4  ;;  %p677_p10 = scmp.ne.s32.totalorder %s882_s4, %s676_s16  ;;  %s57_s12 = int_to_ptr.vmem [resolvable:$true] %s56_s12 }
  0x36   :  { %p680_p11 = scmp.lt.u32.totalorder %s676_s16, %s882_s4 }
  0x38   :  { %p682_p12 = pnand %p680_p11, %p677_p10 }
  0x3a   :  { %685 = shalt.err (!%p682_p12)
}
  0x3b   :  { %s686_s21 = scalar_lea.vmem %s57_s12, 2048  ;;  %p691_p0 = scmp.lt.s32.totalorder %s57_s12, %s57_s12 }
  0x3c   :  { %p687_p13 = scmp.ne.s32.totalorder %s57_s12, %s686_s21  ;;  %p692_p1 = scmp.lt.s32.totalorder %s686_s21, %s686_s21 }
  0x3e   :  { %p693_p2 = por %p692_p1, %p691_p0 }
  0x40   :  { %p694_p3 = pnand %p693_p2, %p687_p13 }
  0x42   :  { %697 = shalt.err (!%p694_p3)
}
  0x43   :  { %62 = dma.hbm_to_vmem [thread:$0]  %s882_s4, 2048, %s57_s12, [#allocation9], %s729_s7, %s729_s7, %s730_s8  }
  0x44   :  { %720 = dma.done.wait [#allocation3], 128  }
  0x45   :  { %721 = vsyncadd [#allocation3], 4294967168 }
  0x46   :  { %722 = dma.done.wait [#allocation6], 4096  }
  0x47   :  { %723 = vsyncadd [#allocation6], 4294963200 }
  0x48   :  { %724 = dma.done.wait [#allocation9], 2048  }
  0x49   :  { %725 = vsyncadd [#allocation9], 4294965248  ;;  %v734_v0 = vmov 0.0|0.0   ;;  %vm735_vm0 = vmmov 0   ;;  %v736_v1 = vmov 0.0   ;;  %v78_v2 = vld [vmem:[#allocation5] sm:$0xff] }
  0x4a   :  { %528 = vmatprep.subr.bf16.mxu0 %v734_v0  ;;  %455 = vmatprep.mubr.msk.f32.mxu0 %vm735_vm0, %v736_v1  ;;  %v79_v3 = vld [vmem:[#allocation5 + $0x8] sm:$0xff]  ;;  %v80_v4 = vld [vmem:[#allocation5 + $0x10] sm:$0xff]  ;;  %v81_v6 = vld [vmem:[#allocation5 + $0x18] sm:$0xff]  ;;  %s737_s22 = smov [#allocation10]  }
  0x4b   :  { %552 = vmatprep.subr.bf16.mxu1 %v734_v0  ;;  %490 = vmatprep.mubr.msk.f32.mxu1 %vm735_vm0, %v736_v1  ;;  %v529_v5 = vpack.c.bf16 %v79_v3, %v78_v2  ;;  %v532_v7 = vpack.c.bf16 %v81_v6, %v80_v4  ;;  %v82_v8 = vld [vmem:[#allocation5 + $0x20] sm:$0xff]  ;;  %v83_v9 = vld [vmem:[#allocation5 + $0x28] sm:$0xff]  ;;  %v190_v14 = vld [vmem:[#allocation7 + $0x10] sm:$0xff]  ;;  %s359_s23 = sshll.u32 %s737_s22, 4  ;;  %s360_s23 = int_to_ptr.vmem [resolvable:$true] %s359_s23 }
  0x4c   :  { %v188_v10 = vld [vmem:[#allocation7] sm:$0xff]  ;;  %v189_v11 = vld [vmem:[#allocation7 + $0x8] sm:$0xff]  ;;  %v535_v12 = vpack.c.bf16 %v83_v9, %v82_v8  ;;  %v84_v15 = vld [vmem:[#allocation5 + $0x30] sm:$0xff]  ;;  %p703_p5 = scmp.lt.s32.totalorder %s360_s23, %s360_s23 }
  0x4d   :  { %530 = vmatpush3.bf16.msra.mxu0 %v529_v5  ;;  %v553_v13 = vpack.c.bf16 %v189_v11, %v188_v10  ;;  %v85_v16 = vld [vmem:[#allocation5 + $0x38] sm:$0xff]  ;;  %v192_v19 = vld [vmem:[#allocation7 + $0x20] sm:$0xff]  ;;  %v193_v20 = vld [vmem:[#allocation7 + $0x28] sm:$0xff] }
  0x4e   :  { %531 = vmatprep.subr.bf16.mxu0 %v734_v0  ;;  %v191_v17 = vld [vmem:[#allocation7 + $0x18] sm:$0xff]  ;;  %v538_v21 = vpack.c.bf16 %v85_v16, %v84_v15  ;;  %v86_v22 = vld [vmem:[#allocation5 + $0x40] sm:$0xff]  ;;  %v87_v23 = vld [vmem:[#allocation5 + $0x48] sm:$0xff]  ;;  %v559_v24 = vpack.c.bf16 %v193_v20, %v192_v19 }
  0x4f   :  { %554 = vmatpush3.bf16.msra.mxu1 %v553_v13  ;;  %v556_v18 = vpack.c.bf16 %v191_v17, %v190_v14  ;;  %v194_v25 = vld [vmem:[#allocation7 + $0x30] sm:$0xff]  ;;  %v195_v26 = vld [vmem:[#allocation7 + $0x38] sm:$0xff]  ;;  %v541_v27 = vpack.c.bf16 %v87_v23, %v86_v22  ;;  %v196_v31 = vld [vmem:[#allocation7 + $0x40] sm:$0xff] }
  0x50   :  { %555 = vmatprep.subr.bf16.mxu1 %v734_v0  ;;  %v88_v28 = vld [vmem:[#allocation5 + $0x50] sm:$0xff]  ;;  %v89_v29 = vld [vmem:[#allocation5 + $0x58] sm:$0xff]  ;;  %v562_v30 = vpack.c.bf16 %v195_v26, %v194_v25  ;;  %v197_v32 = vld [vmem:[#allocation7 + $0x48] sm:$0xff] }
  0x51   :  { %533 = vmatpush3.bf16.msra.mxu0 %v532_v7  ;;  %v544_v33 = vpack.c.bf16 %v89_v29, %v88_v28  ;;  %v90_v34 = vld [vmem:[#allocation5 + $0x60] sm:$0xff]  ;;  %v91_v35 = vld [vmem:[#allocation5 + $0x68] sm:$0xff]  ;;  %v565_v36 = vpack.c.bf16 %v197_v32, %v196_v31  ;;  %v198_v37 = vld [vmem:[#allocation7 + $0x50] sm:$0xff] }
  0x52   :  { %534 = vmatprep.subr.bf16.mxu0 %v734_v0  ;;  %v199_v38 = vld [vmem:[#allocation7 + $0x58] sm:$0xff]  ;;  %v547_v39 = vpack.c.bf16 %v91_v35, %v90_v34  ;;  %v92_v40 = vld [vmem:[#allocation5 + $0x70] sm:$0xff]  ;;  %v200_v43 = vld [vmem:[#allocation7 + $0x60] sm:$0xff] }
  0x53   :  { %557 = vmatpush3.bf16.msra.mxu1 %v556_v18  ;;  %v93_v41 = vld [vmem:[#allocation5 + $0x78] sm:$0xff]  ;;  %v568_v42 = vpack.c.bf16 %v199_v38, %v198_v37  ;;  %v201_v44 = vld [vmem:[#allocation7 + $0x68] sm:$0xff]  ;;  %v172_v46 = vld [vmem:[#allocation8] sm:$0xff] }
  0x54   :  { %558 = vmatprep.subr.bf16.mxu1 %v734_v0  ;;  %v550_v45 = vpack.c.bf16 %v93_v41, %v92_v40  ;;  %v173_v47 = vld [vmem:[#allocation8 + $0x8] sm:$0xff]  ;;  %v571_v48 = vpack.c.bf16 %v201_v44, %v200_v43  ;;  %v77_v49 = vld [vmem:[#allocation2] sm:$0xff]  ;;  %v174_v51 = vld [vmem:[#allocation8 + $0x10] sm:$0xff] }
  0x55   :  { %536 = vmatpush3.bf16.msra.mxu0 %v535_v12  ;;  %v577_v50 = vpack.c.bf16 %v173_v47, %v172_v46  ;;  %v175_v52 = vld [vmem:[#allocation8 + $0x18] sm:$0xff]  ;;  %v176_v54 = vld [vmem:[#allocation8 + $0x20] sm:$0xff]  ;;  %v177_v55 = vld [vmem:[#allocation8 + $0x28] sm:$0xff] }
  0x56   :  { %537 = vmatprep.subr.bf16.mxu0 %v734_v0  ;;  %v580_v53 = vpack.c.bf16 %v175_v52, %v174_v51  ;;  %v583_v56 = vpack.c.bf16 %v177_v55, %v176_v54  ;;  %v178_v57 = vld [vmem:[#allocation8 + $0x30] sm:$0xff]  ;;  %v179_v58 = vld [vmem:[#allocation8 + $0x38] sm:$0xff]  ;;  %v180_v60 = vld [vmem:[#allocation8 + $0x40] sm:$0xff] }
  0x57   :  { %560 = vmatpush3.bf16.msra.mxu1 %v559_v24  ;;  %v586_v59 = vpack.c.bf16 %v179_v58, %v178_v57  ;;  %v181_v61 = vld [vmem:[#allocation8 + $0x48] sm:$0xff]  ;;  %v182_v63 = vld [vmem:[#allocation8 + $0x50] sm:$0xff]  ;;  %v184_v3 = vld [vmem:[#allocation8 + $0x60] sm:$0xff] }
  0x58   :  { %561 = vmatprep.subr.bf16.mxu1 %v734_v0  ;;  %v589_v62 = vpack.c.bf16 %v181_v61, %v180_v60  ;;  %v185_v4 = vld [vmem:[#allocation8 + $0x68] sm:$0xff]  ;;  %v186_v6 = vld [vmem:[#allocation8 + $0x70] sm:$0xff]  ;;  %v187_v7 = vld [vmem:[#allocation8 + $0x78] sm:$0xff] }
  0x59   :  { %539 = vmatpush3.bf16.msra.mxu0 %v538_v21  ;;  %v595_v5 = vpack.c.bf16 %v185_v4, %v184_v3  ;;  %v598_v8 = vpack.c.bf16 %v187_v7, %v186_v6  ;;  %v202_v9 = vld [vmem:[#allocation7 + $0x70] sm:$0xff]  ;;  %v203_v10 = vld [vmem:[#allocation7 + $0x78] sm:$0xff] }
  0x5a   :  { %540 = vmatprep.subr.bf16.mxu0 %v734_v0  ;;  %v574_v11 = vpack.c.bf16 %v203_v10, %v202_v9  ;;  %v370_v12 = vld [vmem:[%s880_s2] ss:$0 sm:$0xff]  ;;  %s698_s2 = scalar_lea.vmem %s360_s23, 128 }
  0x5b   :  { %563 = vmatpush3.bf16.msra.mxu1 %v562_v30  ;;  %v371_v19 = vld [vmem:[%s883_s5] ss:$0 sm:$0xff]  ;;  %p699_p4 = scmp.ne.s32.totalorder %s360_s23, %s698_s2  ;;  %p704_p6 = scmp.lt.s32.totalorder %s698_s2, %s698_s2 }
  0x5c   :  { %564 = vmatprep.subr.bf16.mxu1 %v734_v0 }
  0x5d   :  { %542 = vmatpush3.bf16.msra.mxu0 %v541_v27  ;;  %p705_p7 = por %p704_p6, %p703_p5 }
  0x5e   :  { %543 = vmatprep.subr.bf16.mxu0 %v734_v0 }
  0x5f   :  { %566 = vmatpush3.bf16.msra.mxu1 %v565_v36  ;;  %p706_p8 = pnand %p705_p7, %p699_p4 }
  0x60   :  { %567 = vmatprep.subr.bf16.mxu1 %v734_v0 }
  0x61   :  { %545 = vmatpush3.bf16.msra.mxu0 %v544_v33 }
  0x62   :  { %546 = vmatprep.subr.bf16.mxu0 %v734_v0 }
  0x63   :  { %569 = vmatpush3.bf16.msra.mxu1 %v568_v42 }
  0x64   :  { %570 = vmatprep.subr.bf16.mxu1 %v734_v0 }
  0x65   :  { %548 = vmatpush3.bf16.msra.mxu0 %v547_v39 }
  0x66   :  { %549 = vmatprep.subr.bf16.mxu0 %v734_v0 }
  0x67   :  { %572 = vmatpush3.bf16.msra.mxu1 %v571_v48 }
  0x68   :  { %573 = vmatprep.subr.bf16.mxu1 %v734_v0 }
  0x69   :  { %551 = vmatpush3.bf16.msra.mxu0 %v550_v45 }
  0x6a   :  { %576 = vmatprep.subr.bf16.mxu0 %v734_v0 }
  0x6b   :  { %575 = vmatpush3.bf16.msra.mxu1 %v574_v11 }
  0x6c   :  { %456 = vmatmul.mubr.f32.vlgmr.msra.gmra.mrb[0].mxu0 %v77_v49 }
  0x6d   :  { %578 = vmatpush3.bf16.msra.mxu0 %v577_v50  ;;  %525 = vmatprep.mubr.msk.f32.mxu0 %vm735_vm0, %v736_v1  ;;  %v183_v1 = vld [vmem:[#allocation8 + $0x58] sm:$0xff] }
  0x6e   :  { %579 = vmatprep.subr.bf16.mxu0 %v734_v0  ;;  %v592_v2 = vpack.c.bf16 %v183_v1, %v182_v63 }
  0x71   :  { %581 = vmatpush3.bf16.msra.mxu0 %v580_v53 }
  0x72   :  { %582 = vmatprep.subr.bf16.mxu0 %v734_v0 }
  0x75   :  { %584 = vmatpush3.bf16.msra.mxu0 %v583_v56 }
  0x76   :  { %585 = vmatprep.subr.bf16.mxu0 %v734_v0 }
  0x79   :  { %587 = vmatpush3.bf16.msra.mxu0 %v586_v59 }
  0x7a   :  { %588 = vmatprep.subr.bf16.mxu0 %v734_v0 }
  0x7d   :  { %590 = vmatpush3.bf16.msra.mxu0 %v589_v62 }
  0x7e   :  { %591 = vmatprep.subr.bf16.mxu0 %v734_v0 }
  0x81   :  { %593 = vmatpush3.bf16.msra.mxu0 %v592_v2 }
  0x82   :  { %594 = vmatprep.subr.bf16.mxu0 %v734_v0 }
  0x85   :  { %596 = vmatpush3.bf16.msra.mxu0 %v595_v5 }
  0x86   :  { %597 = vmatprep.subr.bf16.mxu0 %v734_v0 }
  0x89   :  { %599 = vmatpush3.bf16.msra.mxu0 %v598_v8 }
  0x8c   :  { %526 = vmatmul.mubr.f32.vlgmr.msra.gmra.mrb[2].mxu0 %v77_v49 }
 0x13f   :  { %v167_v13 = vpop.f32.mrb[0].mxu0 }
 0x140   :  { %v168_v14 = vadd.f32 %v370_v12, %v167_v13  ;;  %v457_v15 = vpop.f32.mrb[1].mxu0 }
 0x142   :  { %v171_v16 = vmax.f32 %v168_v14, 0.0 }
 0x144   :  { %491 = vmatmul.mubr.f32.vlgmr.msra.gmra.mrb[0].mxu1 %v171_v16 }
 0x15f   :  { %v340_v17 = vpop.f32.mrb[2].mxu0 }
 0x160   :  { %v527_v0 = vpop.f32.mrb[3].mxu0 }
 0x217   :  { %v270_v18 = vpop.f32.mrb[0].mxu1 }
 0x218   :  { %v341_v20 = vadd.f32 %v340_v17, %v270_v18  ;;  %v492_v21 = vpop.f32.mrb[1].mxu1 }
 0x21a   :  { %v351_v22 = vadd.f32 %v371_v19, %v341_v20 }
 0x21c   :  { %352 = vst [vmem:[#allocation10] sm:$0xff] %v351_v22 }
 0x21d   :  { %709 = shalt.err (!%p706_p8)
}
 0x21e   :  { %s710_s26 = scalar_lea.hbm %s884_s6, 128 }
 0x21f   :  { %p711_p9 = scmp.ne.s32.totalorder %s884_s6, %s710_s26  ;;  %p714_p10 = scmp.lt.u32.totalorder %s710_s26, %s884_s6 }
 0x221   :  { %p716_p11 = pnand %p714_p10, %p711_p9 }
 0x223   :  { %719 = shalt.err (!%p716_p11)
}
 0x224   :  { %362 = dma.vmem_to_hbm [thread:$0]  %s360_s23, 128, %s884_s6, [#allocation4]  }
 0x225   :  { %726 = dma.done.wait [#allocation4], 128  }
 0x226   :  { %727 = vsyncadd [#allocation4], 4294967168 }
 0x227   :  { %366 = vsyncpa [#allocation3], 1 }
 0x228   :  { %367 = vsyncpa [#allocation6], 1 }
 0x229   :  { %368 = vsyncpa [#allocation9], 1 }
 0x22a   :  { %369 = vsyncpa [#allocation4], 1 }

</bundles_post_ra>
